<compile_context>
chip_gen: v7x
topology: tpu7x:2x2x1
jax: 0.10.0
libtpu: 0.0.40
codegen_flags: <defaults>
</compile_context>

<pallas_src>
import jax
import jax.numpy as jnp
from jax.experimental import pallas as pl
from jax.experimental.pallas import tpu as pltpu


NUM_CLASSES = 10
PADDED_CLASSES = 128      # lane-dense final layer (pad 10 -> 128 output lanes)
NEG_INF = -1e30           # bias of padded logit columns => exp() ~ 0 in the LSE
IN_FEATURES = 784


def _round_up(x, m):
    return (x + m - 1) // m * m


def mlp_kernel(x_ref, w1_ref, b1_ref, w2_ref, b2_ref,
               w3_ref, b3_ref, w4_ref, b4_ref, o_ref):
    # x: (TB, 784) bf16; weights bf16; biases f32; MXU accumulates in f32.
    x = x_ref[...]

    h = jnp.dot(x, w1_ref[...], preferred_element_type=jnp.float32) + b1_ref[...]
    h = jnp.maximum(h, 0.0)                                      # (TB, 256) f32
    # TODO(synk): dropout(p=0.2) omitted — identity at inference.

    h = jnp.dot(h.astype(jnp.bfloat16), w2_ref[...],
                preferred_element_type=jnp.float32) + b2_ref[...]
    h = jnp.maximum(h, 0.0)                                      # (TB, 128)

    h = jnp.dot(h.astype(jnp.bfloat16), w3_ref[...],
                preferred_element_type=jnp.float32) + b3_ref[...]
    h = jnp.maximum(h, 0.0)                                      # (TB, 64)

    # Lane-dense last layer: W4 is (64, 128) with columns 10..127 zero and the
    # corresponding bias columns a large negative, so a 128-lane log_softmax
    # equals the 10-class one on the real columns.
    logits = jnp.dot(h.astype(jnp.bfloat16), w4_ref[...],
                     preferred_element_type=jnp.float32) + b4_ref[...]  # (TB, 128)

    m = jnp.max(logits, axis=-1, keepdims=True)
    shifted = logits - m
    lse = jnp.log(jnp.sum(jnp.exp(shifted), axis=-1, keepdims=True))
    o_ref[...] = (shifted - lse).astype(o_ref.dtype)


def my_awesome_model(x, params, *, block_b=512):
    """x: (B, 1, 28, 28) float32, NCHW. Returns (B, 10) log-probabilities."""
    if x.ndim != 4:
        raise ValueError('Expected input to a 4D tensor')
    if x.shape[1] != 1 or x.shape[2] != 28 or x.shape[3] != 28:
        raise ValueError('Expected input to specific shape')

    B = x.shape[0]
    x2d = x.reshape(B, IN_FEATURES).astype(jnp.bfloat16)

    w1, b1, w2, b2, w3, b3, w4, b4 = params

    # bf16 operands for the MXU; biases stay f32 (added to the f32 accumulator).
    w1 = w1.astype(jnp.bfloat16)
    w2 = w2.astype(jnp.bfloat16)
    w3 = w3.astype(jnp.bfloat16)
    w4 = w4.astype(jnp.bfloat16)
    b1 = b1.astype(jnp.float32)
    b2 = b2.astype(jnp.float32)
    b3 = b3.astype(jnp.float32)

    # Lane-dense final layer padding.
    w4p = jnp.zeros((64, PADDED_CLASSES), jnp.bfloat16).at[:, :NUM_CLASSES].set(w4)
    b4p = (jnp.full((1, PADDED_CLASSES), NEG_INF, jnp.float32)
           .at[:, :NUM_CLASSES].set(b4.astype(jnp.float32)))

    # Batch tiling: TB rows per grid step (pad B up to a multiple of TB).
    tb = min(block_b, _round_up(B, 8))
    Bp = _round_up(B, tb)
    if Bp != B:
        x2d = jnp.pad(x2d, ((0, Bp - B), (0, 0)))
    grid = (Bp // tb,)

    flops = 2 * Bp * (784 * 256 + 256 * 128 + 128 * 64 + 64 * PADDED_CLASSES)
    bytes_accessed = (
        Bp * IN_FEATURES * 2                                           # x (bf16)
        + (784 * 256 + 256 * 128 + 128 * 64 + 64 * PADDED_CLASSES) * 2  # weights
        + (256 + 128 + 64 + PADDED_CLASSES) * 4                          # biases
        + Bp * PADDED_CLASSES * 4)                                       # output
    cost = pl.CostEstimate(flops=flops,
                           transcendentals=Bp * PADDED_CLASSES,
                           bytes_accessed=bytes_accessed)

    in_specs = [
        pl.BlockSpec((tb, IN_FEATURES), lambda i: (i, 0)),        # x tile
        pl.BlockSpec((784, 256), lambda i: (0, 0)),               # resident weights
        pl.BlockSpec((1, 256), lambda i: (0, 0)),
        pl.BlockSpec((256, 128), lambda i: (0, 0)),
        pl.BlockSpec((1, 128), lambda i: (0, 0)),
        pl.BlockSpec((128, 64), lambda i: (0, 0)),
        pl.BlockSpec((1, 64), lambda i: (0, 0)),
        pl.BlockSpec((64, PADDED_CLASSES), lambda i: (0, 0)),
        pl.BlockSpec((1, PADDED_CLASSES), lambda i: (0, 0)),
    ]
    out_specs = pl.BlockSpec((tb, PADDED_CLASSES), lambda i: (i, 0))

    out = pl.pallas_call(
        mlp_kernel,
        out_shape=jax.ShapeDtypeStruct((Bp, PADDED_CLASSES), jnp.float32),
        grid=grid,
        in_specs=in_specs,
        out_specs=out_specs,
        compiler_params=pltpu.CompilerParams(
            dimension_semantics=("parallel",)),
        cost_estimate=cost,
    )(x2d, w1, b1, w2, b2, w3, b3, w4p, b4p)

    return out[:B, :NUM_CLASSES]


def init_params(key):
    """Deterministic init matching nn.Linear shapes (weights stored transposed)."""
    dims = [(784, 256), (256, 128), (128, 64), (64, 10)]
    params = []
    for i, (din, dout) in enumerate(dims):
        kw, kb = jax.random.split(jax.random.fold_in(key, i))
        bound = 1.0 / (din ** 0.5)
        w = jax.random.uniform(kw, (din, dout), jnp.float32, -bound, bound)
        b = jax.random.uniform(kb, (1, dout), jnp.float32, -bound, bound)
        params += [w, b]
    return tuple(params)


if __name__ == "__main__":
    key = jax.random.PRNGKey(0)
    params = init_params(key)

    x = jax.random.normal(jax.random.fold_in(key, 100), (2, 1, 28, 28), jnp.float32)

    out = my_awesome_model(x, params)
    out = jax.block_until_ready(out)
    assert out.shape == (2, 10)

    # Reference 1: pure-JAX forward with the SAME bf16-operand / f32-accum
    # numerics as the kernel (tight tolerance).
    def ref_bf16(x, params):
        w1, b1, w2, b2, w3, b3, w4, b4 = params

        def layer(h, w, b):
            return jnp.dot(h.astype(jnp.bfloat16), w.astype(jnp.bfloat16),
                           preferred_element_type=jnp.float32) + b

        h = x.reshape(x.shape[0], -1)
        h = jnp.maximum(layer(h, w1, b1), 0.0)
        h = jnp.maximum(layer(h, w2, b2), 0.0)
        h = jnp.maximum(layer(h, w3, b3), 0.0)
        logits = layer(h, w4, b4)
        return jax.nn.log_softmax(logits, axis=1)

    # Reference 2: full-f32 forward (loose tolerance, sanity on the bf16 cast).
    def ref_f32(x, params):
        w1, b1, w2, b2, w3, b3, w4, b4 = params
        h = x.reshape(x.shape[0], -1)
        h = jnp.maximum(h @ w1 + b1, 0.0)
        h = jnp.maximum(h @ w2 + b2, 0.0)
        h = jnp.maximum(h @ w3 + b3, 0.0)
        return jax.nn.log_softmax(h @ w4 + b4, axis=1)

    exp_bf16 = ref_bf16(x, params)
    exp_f32 = ref_f32(x, params)
    assert jnp.allclose(out, exp_bf16, atol=1e-3, rtol=1e-3), "mismatch vs bf16 reference"
    assert jnp.allclose(out, exp_f32, atol=5e-2, rtol=5e-2), "mismatch vs f32 reference"

    print("KERNEL_OK")
</pallas_src>

<mosaic_0001>
module attributes {stable_mosaic.version = 11 : i64} {
  func.func @mlp_kernel(%arg0: i32, %arg1: memref<8x784xbf16, #tpu.memory_space<vmem>>, %arg2: memref<784x256xbf16, #tpu.memory_space<vmem>>, %arg3: memref<1x256xf32, #tpu.memory_space<vmem>>, %arg4: memref<256x128xbf16, #tpu.memory_space<vmem>>, %arg5: memref<1x128xf32, #tpu.memory_space<vmem>>, %arg6: memref<128x64xbf16, #tpu.memory_space<vmem>>, %arg7: memref<1x64xf32, #tpu.memory_space<vmem>>, %arg8: memref<64x128xbf16, #tpu.memory_space<vmem>>, %arg9: memref<1x128xf32, #tpu.memory_space<vmem>>, %arg10: memref<8x128xf32, #tpu.memory_space<vmem>>) attributes {dimension_semantics = [#tpu.dimension_semantics<parallel>], iteration_bounds = array<i64: 1>, scalar_prefetch = 0 : i64, scratch_operands = 0 : i64, tpu.core_type = #tpu.core_type<tc>, window_params = [{transform_indices = @transform_0, window_bounds = array<i64: 8, 784>}, {pipeline_mode = #tpu.pipeline_mode<synchronous>, transform_indices = @transform_1, window_bounds = array<i64: 784, 256>}, {pipeline_mode = #tpu.pipeline_mode<synchronous>, transform_indices = @transform_2, window_bounds = array<i64: 1, 256>}, {pipeline_mode = #tpu.pipeline_mode<synchronous>, transform_indices = @transform_3, window_bounds = array<i64: 256, 128>}, {pipeline_mode = #tpu.pipeline_mode<synchronous>, transform_indices = @transform_4, window_bounds = array<i64: 1, 128>}, {pipeline_mode = #tpu.pipeline_mode<synchronous>, transform_indices = @transform_5, window_bounds = array<i64: 128, 64>}, {pipeline_mode = #tpu.pipeline_mode<synchronous>, transform_indices = @transform_6, window_bounds = array<i64: 1, 64>}, {pipeline_mode = #tpu.pipeline_mode<synchronous>, transform_indices = @transform_7, window_bounds = array<i64: 64, 128>}, {pipeline_mode = #tpu.pipeline_mode<synchronous>, transform_indices = @transform_8, window_bounds = array<i64: 1, 128>}, {transform_indices = @transform_9, window_bounds = array<i64: 8, 128>}]} {
    %c0 = arith.constant 0 : index
    %c0_0 = arith.constant 0 : index
    %0 = vector.load %arg1[%c0, %c0_0] : memref<8x784xbf16, #tpu.memory_space<vmem>>, vector<8x784xbf16>
    %c0_1 = arith.constant 0 : index
    %c0_2 = arith.constant 0 : index
    %1 = vector.load %arg2[%c0_1, %c0_2] : memref<784x256xbf16, #tpu.memory_space<vmem>>, vector<784x256xbf16>
    %cst = arith.constant dense<0.000000e+00> : vector<8x256xf32>
    %2 = tpu.matmul %0, %1, %cst {dimension_numbers = #tpu.dot_dimension_numbers<[1], [0], [0], [1], [0, 0, 1, 1], [], []>} : vector<8x784xbf16>, vector<784x256xbf16>, vector<8x256xf32> -> vector<8x256xf32>
    %c0_3 = arith.constant 0 : index
    %c0_4 = arith.constant 0 : index
    %3 = vector.load %arg3[%c0_3, %c0_4] : memref<1x256xf32, #tpu.memory_space<vmem>>, vector<1x256xf32>
    %4 = vector.broadcast %3 : vector<1x256xf32> to vector<8x256xf32>
    %5 = arith.addf %2, %4 : vector<8x256xf32>
    %cst_5 = arith.constant 0.000000e+00 : f32
    %6 = vector.broadcast %cst_5 : f32 to vector<8x256xf32>
    %7 = arith.maximumf %5, %6 : vector<8x256xf32>
    %8 = arith.truncf %7 : vector<8x256xf32> to vector<8x256xbf16>
    %c0_6 = arith.constant 0 : index
    %c0_7 = arith.constant 0 : index
    %9 = vector.load %arg4[%c0_6, %c0_7] : memref<256x128xbf16, #tpu.memory_space<vmem>>, vector<256x128xbf16>
    %cst_8 = arith.constant dense<0.000000e+00> : vector<8x128xf32>
    %10 = tpu.matmul %8, %9, %cst_8 {dimension_numbers = #tpu.dot_dimension_numbers<[1], [0], [0], [1], [0, 0, 1, 1], [], []>} : vector<8x256xbf16>, vector<256x128xbf16>, vector<8x128xf32> -> vector<8x128xf32>
    %c0_9 = arith.constant 0 : index
    %c0_10 = arith.constant 0 : index
    %11 = vector.load %arg5[%c0_9, %c0_10] : memref<1x128xf32, #tpu.memory_space<vmem>>, vector<1x128xf32>
    %12 = vector.broadcast %11 : vector<1x128xf32> to vector<8x128xf32>
    %13 = arith.addf %10, %12 : vector<8x128xf32>
    %cst_11 = arith.constant 0.000000e+00 : f32
    %14 = vector.broadcast %cst_11 : f32 to vector<8x128xf32>
    %15 = arith.maximumf %13, %14 : vector<8x128xf32>
    %16 = arith.truncf %15 : vector<8x128xf32> to vector<8x128xbf16>
    %c0_12 = arith.constant 0 : index
    %c0_13 = arith.constant 0 : index
    %17 = vector.load %arg6[%c0_12, %c0_13] : memref<128x64xbf16, #tpu.memory_space<vmem>>, vector<128x64xbf16>
    %cst_14 = arith.constant dense<0.000000e+00> : vector<8x64xf32>
    %18 = tpu.matmul %16, %17, %cst_14 {dimension_numbers = #tpu.dot_dimension_numbers<[1], [0], [0], [1], [0, 0, 1, 1], [], []>} : vector<8x128xbf16>, vector<128x64xbf16>, vector<8x64xf32> -> vector<8x64xf32>
    %c0_15 = arith.constant 0 : index
    %c0_16 = arith.constant 0 : index
    %19 = vector.load %arg7[%c0_15, %c0_16] : memref<1x64xf32, #tpu.memory_space<vmem>>, vector<1x64xf32>
    %20 = vector.broadcast %19 : vector<1x64xf32> to vector<8x64xf32>
    %21 = arith.addf %18, %20 : vector<8x64xf32>
    %cst_17 = arith.constant 0.000000e+00 : f32
    %22 = vector.broadcast %cst_17 : f32 to vector<8x64xf32>
    %23 = arith.maximumf %21, %22 : vector<8x64xf32>
    %24 = arith.truncf %23 : vector<8x64xf32> to vector<8x64xbf16>
    %c0_18 = arith.constant 0 : index
    %c0_19 = arith.constant 0 : index
    %25 = vector.load %arg8[%c0_18, %c0_19] : memref<64x128xbf16, #tpu.memory_space<vmem>>, vector<64x128xbf16>
    %cst_20 = arith.constant dense<0.000000e+00> : vector<8x128xf32>
    %26 = tpu.matmul %24, %25, %cst_20 {dimension_numbers = #tpu.dot_dimension_numbers<[1], [0], [0], [1], [0, 0, 1, 1], [], []>} : vector<8x64xbf16>, vector<64x128xbf16>, vector<8x128xf32> -> vector<8x128xf32>
    %c0_21 = arith.constant 0 : index
    %c0_22 = arith.constant 0 : index
    %27 = vector.load %arg9[%c0_21, %c0_22] : memref<1x128xf32, #tpu.memory_space<vmem>>, vector<1x128xf32>
    %28 = vector.broadcast %27 : vector<1x128xf32> to vector<8x128xf32>
    %29 = arith.addf %26, %28 : vector<8x128xf32>
    %cst_23 = arith.constant dense<0xFF800000> : vector<8xf32>
    %30 = vector.multi_reduction <maximumf>, %29, %cst_23 [1] : vector<8x128xf32> to vector<8xf32>
    %31 = vector.shape_cast %30 : vector<8xf32> to vector<8x1xf32>
    %32 = vector.broadcast %31 : vector<8x1xf32> to vector<8x128xf32>
    %33 = arith.subf %29, %32 : vector<8x128xf32>
    %34 = math.exp %33 : vector<8x128xf32>
    %cst_24 = arith.constant dense<0.000000e+00> : vector<8xf32>
    %35 = vector.multi_reduction <add>, %34, %cst_24 [1] : vector<8x128xf32> to vector<8xf32>
    %36 = vector.shape_cast %35 : vector<8xf32> to vector<8x1xf32>
    %37 = math.log %36 : vector<8x1xf32>
    %38 = vector.broadcast %37 : vector<8x1xf32> to vector<8x128xf32>
    %39 = arith.subf %33, %38 : vector<8x128xf32>
    %c0_25 = arith.constant 0 : index
    %c0_26 = arith.constant 0 : index
    %40 = vector.load %arg10[%c0_25, %c0_26] : memref<8x128xf32, #tpu.memory_space<vmem>>, vector<8x128xf32>
    tpu.vector_store %arg10[%c0_25, %c0_26], %39 {strides = array<i32>} : memref<8x128xf32, #tpu.memory_space<vmem>>, vector<8x128xf32>,
    return
  }
  func.func @transform_0(%arg0: i32) -> (i32, i32) {
    %c0_i32 = arith.constant 0 : i32
    %c0_i32_0 = arith.constant 0 : i32
    return %arg0, %c0_i32 : i32, i32
  }
  func.func @transform_1(%arg0: i32) -> (i32, i32) {
    %c0_i32 = arith.constant 0 : i32
    %c0_i32_0 = arith.constant 0 : i32
    %c0_i32_1 = arith.constant 0 : i32
    return %c0_i32, %c0_i32_0 : i32, i32
  }
  func.func @transform_2(%arg0: i32) -> (i32, i32) {
    %c0_i32 = arith.constant 0 : i32
    %c0_i32_0 = arith.constant 0 : i32
    %c0_i32_1 = arith.constant 0 : i32
    return %c0_i32, %c0_i32_0 : i32, i32
  }
  func.func @transform_3(%arg0: i32) -> (i32, i32) {
    %c0_i32 = arith.constant 0 : i32
    %c0_i32_0 = arith.constant 0 : i32
    %c0_i32_1 = arith.constant 0 : i32
    return %c0_i32, %c0_i32_0 : i32, i32
  }
  func.func @transform_4(%arg0: i32) -> (i32, i32) {
    %c0_i32 = arith.constant 0 : i32
    %c0_i32_0 = arith.constant 0 : i32
    %c0_i32_1 = arith.constant 0 : i32
    return %c0_i32, %c0_i32_0 : i32, i32
  }
  func.func @transform_5(%arg0: i32) -> (i32, i32) {
    %c0_i32 = arith.constant 0 : i32
    %c0_i32_0 = arith.constant 0 : i32
    %c0_i32_1 = arith.constant 0 : i32
    return %c0_i32, %c0_i32_0 : i32, i32
  }
  func.func @transform_6(%arg0: i32) -> (i32, i32) {
    %c0_i32 = arith.constant 0 : i32
    %c0_i32_0 = arith.constant 0 : i32
    %c0_i32_1 = arith.constant 0 : i32
    return %c0_i32, %c0_i32_0 : i32, i32
  }
  func.func @transform_7(%arg0: i32) -> (i32, i32) {
    %c0_i32 = arith.constant 0 : i32
    %c0_i32_0 = arith.constant 0 : i32
    %c0_i32_1 = arith.constant 0 : i32
    return %c0_i32, %c0_i32_0 : i32, i32
  }
  func.func @transform_8(%arg0: i32) -> (i32, i32) {
    %c0_i32 = arith.constant 0 : i32
    %c0_i32_0 = arith.constant 0 : i32
    %c0_i32_1 = arith.constant 0 : i32
    return %c0_i32, %c0_i32_0 : i32, i32
  }
  func.func @transform_9(%arg0: i32) -> (i32, i32) {
    %c0_i32 = arith.constant 0 : i32
    %c0_i32_0 = arith.constant 0 : i32
    return %arg0, %c0_i32 : i32, i32
  }
}

</mosaic_0001>

<bundles_post_ra>
// kernel: tpu_custom_call.1
= control target key start
LH: loop header
LB: loop body
LE: loop exit
PB: predicated region body
PF: predicated region fallthrough
CT: control target
= control target key end

     0   :  { %14 = vsyncpa [#allocation3], 0  ;;  %s1930_s0 = inlined_call_operand.vmem [shape: bf16[8,784], index: 0, kind: input, shape index: {}]   ;;  %s1931_s1 = inlined_call_operand.hbm [shape: bf16[784,256], index: 1, kind: input, shape index: {}]   ;;  %s1932_s2 = inlined_call_operand.vmem [shape: f32[1,256], index: 2, kind: input, shape index: {}]   ;;  %s1933_s3 = inlined_call_operand.hbm [shape: bf16[256,128], index: 3, kind: input, shape index: {}]   ;;  %s1934_s4 = inlined_call_operand.vmem [shape: f32[1,128], index: 4, kind: input, shape index: {}]   ;;  %s1935_s5 = inlined_call_operand.vmem [shape: bf16[128,64], index: 5, kind: input, shape index: {}]   ;;  %s1936_s6 = inlined_call_operand.vmem [shape: f32[1,64], index: 6, kind: input, shape index: {}]   ;;  %s1937_s7 = inlined_call_operand.vmem [shape: bf16[64,128], index: 7, kind: input, shape index: {}]   ;;  %s1938_s8 = inlined_call_operand.vmem [shape: f32[1,128], index: 8, kind: input, shape index: {}]   ;;  %s1939_s9 = inlined_call_operand.hbm [shape: f32[8,128], index: 9, kind: output, shape index: {}]  }
   0x1   :  { %15 = vsyncpa [#allocation6], 0 }
   0x2   :  { %16 = vsyncpa [#allocation4], 0  ;;  %s1748_s30 = smov [#allocation2]   ;;  %s1676_s13 = scalar_lea.hbm %s1931_s1, 12544 }
   0x3   :  { %s24_s10 = sshll.u32 %s1748_s30, 4  ;;  %p1677_p0 = scmp.ne.s32.totalorder %s1931_s1, %s1676_s13  ;;  %s25_s10 = int_to_ptr.vmem [resolvable:$true] %s24_s10 }
   0x4   :  { %p1680_p1 = scmp.lt.u32.totalorder %s1676_s13, %s1931_s1 }
   0x6   :  { %p1682_p2 = pnand %p1680_p1, %p1677_p0 }
   0x8   :  { %1685 = shalt.err (!%p1682_p2)
}
   0x9   :  { %s1686_s18 = scalar_lea.vmem %s25_s10, 12544  ;;  %p1691_p4 = scmp.lt.s32.totalorder %s25_s10, %s25_s10 }
   0xa   :  { %p1687_p3 = scmp.ne.s32.totalorder %s25_s10, %s1686_s18  ;;  %p1692_p5 = scmp.lt.s32.totalorder %s1686_s18, %s1686_s18 }
   0xc   :  { %p1693_p6 = por %p1692_p5, %p1691_p4 }
   0xe   :  { %p1694_p7 = pnand %p1693_p6, %p1687_p3 }
  0x10   :  { %1697 = shalt.err (!%p1694_p7)
}
  0x11   :  { %s1749_s19 = smov 128   ;;  %s1750_s20 = smov 8  }
  0x12   :  { %30 = dma.hbm_to_vmem [thread:$0]  %s1931_s1, 12544, %s25_s10, [#allocation3], %s1749_s19, %s1749_s19, %s1750_s20  }
  0x13   :  { %s1751_s23 = smov [#allocation5]   ;;  %s1698_s27 = scalar_lea.hbm %s1933_s3, 2048 }
  0x14   :  { %s38_s24 = sshll.u32 %s1751_s23, 4  ;;  %p1699_p8 = scmp.ne.s32.totalorder %s1933_s3, %s1698_s27  ;;  %s39_s24 = int_to_ptr.vmem [resolvable:$true] %s38_s24 }
  0x15   :  { %p1702_p9 = scmp.lt.u32.totalorder %s1698_s27, %s1933_s3 }
  0x17   :  { %p1704_p10 = pnand %p1702_p9, %p1699_p8 }
  0x19   :  { %1707 = shalt.err (!%p1704_p10)
}
  0x1a   :  { %s1708_s12 = scalar_lea.vmem %s39_s24, 2048  ;;  %p1713_p12 = scmp.lt.s32.totalorder %s39_s24, %s39_s24 }
  0x1b   :  { %p1709_p11 = scmp.ne.s32.totalorder %s39_s24, %s1708_s12  ;;  %p1714_p13 = scmp.lt.s32.totalorder %s1708_s12, %s1708_s12 }
  0x1d   :  { %p1715_p0 = por %p1714_p13, %p1713_p12 }
  0x1f   :  { %p1716_p1 = pnand %p1715_p0, %p1709_p11 }
  0x21   :  { %1719 = shalt.err (!%p1716_p1)
}
  0x22   :  { %s1752_s1 = smov 64   ;;  %s1753_s10 = smov 4  }
  0x23   :  { %44 = dma.hbm_to_vmem [thread:$0]  %s1933_s3, 2048, %s39_s24, [#allocation6], %s1752_s1, %s1752_s1, %s1753_s10  }
  0x24   :  { %1742 = dma.done.wait [#allocation3], 12544  }
  0x25   :  { %1743 = vsyncadd [#allocation3], 4294954752 }
  0x26   :  { %1744 = dma.done.wait [#allocation6], 2048  }
  0x27   :  { %1745 = vsyncadd [#allocation6], 4294965248  ;;  %v1490_v0 = vld [vmem:[#allocation2 + $0x104] ss:$8 sps:$4 sm:$0xff]   ;;  %v1492_v1 = vld [vmem:[#allocation2 + $0x100] ss:$8 sps:$4 sm:$0xff]  }
  0x28   :  { %735 = vmatprep.subr.bf16.mxu0 %v1490_v0  ;;  %v1493_v2 = vld [vmem:[#allocation2 + $0x114] ss:$8 sps:$4 sm:$0xff]   ;;  %v1495_v3 = vld [vmem:[#allocation2 + $0x110] ss:$8 sps:$4 sm:$0xff]   ;;  %v1496_v4 = vld [vmem:[#allocation2 + $0x124] ss:$8 sps:$4 sm:$0xff]  }
  0x29   :  { %736 = vmatpush1.bf16.msra.mxu0 %v1492_v1  ;;  %v1498_v5 = vld [vmem:[#allocation2 + $0x120] ss:$8 sps:$4 sm:$0xff]   ;;  %v1499_v6 = vld [vmem:[#allocation2 + $0x134] ss:$8 sps:$4 sm:$0xff]   ;;  %v1501_v7 = vld [vmem:[#allocation2 + $0x130] ss:$8 sps:$4 sm:$0xff]  }
  0x2a   :  { %737 = vmatprep.subr.bf16.mxu0 %v1493_v2  ;;  %v1502_v8 = vld [vmem:[#allocation2 + $0x144] ss:$8 sps:$4 sm:$0xff]   ;;  %v1504_v9 = vld [vmem:[#allocation2 + $0x140] ss:$8 sps:$4 sm:$0xff]   ;;  %v1505_v10 = vld [vmem:[#allocation2 + $0x154] ss:$8 sps:$4 sm:$0xff]  }
  0x2b   :  { %v1507_v11 = vld [vmem:[#allocation2 + $0x150] ss:$8 sps:$4 sm:$0xff]   ;;  %v1508_v12 = vld [vmem:[#allocation2 + $0x164] ss:$8 sps:$4 sm:$0xff]   ;;  %v1510_v15 = vld [vmem:[#allocation2 + $0x160] ss:$8 sps:$4 sm:$0xff]  }
  0x2c   :  { %v1835_v13 = vld [vmem:[%s1930_s0 + $0x8] sm:$0xff]  ;;  %v1511_v16 = vld [vmem:[#allocation2 + $0x174] ss:$8 sps:$4 sm:$0xff]   ;;  %v1513_v18 = vld [vmem:[#allocation2 + $0x170] ss:$8 sps:$4 sm:$0xff]   ;;  %vm690_vm0 = vcmask 130048  }
  0x2d   :  { %738 = vmatpush1.bf16.msra.mxu0 %v1495_v3  ;;  %v1265_v14 = vcombine.high %v1835_v13, %v1835_v13  ;;  %v1546_v17 = vld [vmem:[#allocation2 + $0x4] ss:$8 sps:$4 sm:$0xff]   ;;  %v1551_v19 = vld [vmem:[#allocation2] ss:$8 sps:$4 sm:$0xff]   ;;  %v1552_v20 = vld [vmem:[#allocation2 + $0x14] ss:$8 sps:$4 sm:$0xff]   ;;  %v1264_v57 = vcombine.low %v1835_v13, %v1835_v13 }
  0x2e   :  { %739 = vmatprep.subr.bf16.mxu0 %v1496_v4  ;;  %694 = vmatprep.subr.bf16.mxu1 %v1546_v17  ;;  %v1514_v21 = vld [vmem:[#allocation2 + $0x184] ss:$8 sps:$4 sm:$0xff]   ;;  %v1557_v22 = vld [vmem:[#allocation2 + $0x10] ss:$8 sps:$4 sm:$0xff]   ;;  %v1516_v24 = vld [vmem:[#allocation2 + $0x180] ss:$8 sps:$4 sm:$0xff]  }
  0x2f   :  { %767 = vmatprep.mubr.bf16.mxu0 %v1265_v14  ;;  %695 = vmatpush1.bf16.msra.mxu1 %v1551_v19  ;;  %v1558_v23 = vld [vmem:[#allocation2 + $0x24] ss:$8 sps:$4 sm:$0xff]   ;;  %v1517_v25 = vld [vmem:[#allocation2 + $0x194] ss:$8 sps:$4 sm:$0xff]   ;;  %v1563_v26 = vld [vmem:[#allocation2 + $0x20] ss:$8 sps:$4 sm:$0xff]  }
  0x30   :  { %696 = vmatprep.subr.bf16.mxu1 %v1552_v20  ;;  %v1564_v27 = vld [vmem:[#allocation2 + $0x34] ss:$8 sps:$4 sm:$0xff]   ;;  %v1519_v28 = vld [vmem:[#allocation2 + $0x190] ss:$8 sps:$4 sm:$0xff]   ;;  %v1520_v29 = vld [vmem:[#allocation2 + $0x1a4] ss:$8 sps:$4 sm:$0xff]  }
  0x31   :  { %740 = vmatpush1.bf16.msra.mxu0 %v1498_v5  ;;  %v1569_v30 = vld [vmem:[#allocation2 + $0x30] ss:$8 sps:$4 sm:$0xff]   ;;  %v1570_v31 = vld [vmem:[#allocation2 + $0x44] ss:$8 sps:$4 sm:$0xff]   ;;  %v1522_v32 = vld [vmem:[#allocation2 + $0x1a0] ss:$8 sps:$4 sm:$0xff]  }
  0x32   :  { %741 = vmatprep.subr.bf16.mxu0 %v1499_v6  ;;  %v1523_v33 = vld [vmem:[#allocation2 + $0x1b4] ss:$8 sps:$4 sm:$0xff]   ;;  %v1575_v34 = vld [vmem:[#allocation2 + $0x40] ss:$8 sps:$4 sm:$0xff]   ;;  %v1525_v36 = vld [vmem:[#allocation2 + $0x1b0] ss:$8 sps:$4 sm:$0xff]  }
  0x33   :  { %697 = vmatpush1.bf16.msra.mxu1 %v1557_v22  ;;  %v1576_v35 = vld [vmem:[#allocation2 + $0x54] ss:$8 sps:$4 sm:$0xff]   ;;  %v1526_v37 = vld [vmem:[#allocation2 + $0x1c4] ss:$8 sps:$4 sm:$0xff]   ;;  %v1581_v38 = vld [vmem:[#allocation2 + $0x50] ss:$8 sps:$4 sm:$0xff]  }
  0x34   :  { %698 = vmatprep.subr.bf16.mxu1 %v1558_v23  ;;  %v1582_v39 = vld [vmem:[#allocation2 + $0x64] ss:$8 sps:$4 sm:$0xff]   ;;  %v1528_v40 = vld [vmem:[#allocation2 + $0x1c0] ss:$8 sps:$4 sm:$0xff]   ;;  %v1529_v41 = vld [vmem:[#allocation2 + $0x1d4] ss:$8 sps:$4 sm:$0xff]  }
  0x35   :  { %742 = vmatpush1.bf16.msra.mxu0 %v1501_v7  ;;  %v1587_v42 = vld [vmem:[#allocation2 + $0x60] ss:$8 sps:$4 sm:$0xff]   ;;  %v1588_v43 = vld [vmem:[#allocation2 + $0x74] ss:$8 sps:$4 sm:$0xff]   ;;  %v1531_v44 = vld [vmem:[#allocation2 + $0x1d0] ss:$8 sps:$4 sm:$0xff]  }
  0x36   :  { %743 = vmatprep.subr.bf16.mxu0 %v1502_v8  ;;  %v1532_v45 = vld [vmem:[#allocation2 + $0x1e4] ss:$8 sps:$4 sm:$0xff]   ;;  %v1593_v46 = vld [vmem:[#allocation2 + $0x70] ss:$8 sps:$4 sm:$0xff]   ;;  %v1534_v48 = vld [vmem:[#allocation2 + $0x1e0] ss:$8 sps:$4 sm:$0xff]  }
  0x37   :  { %699 = vmatpush1.bf16.msra.mxu1 %v1563_v26  ;;  %v1594_v47 = vld [vmem:[#allocation2 + $0x84] ss:$8 sps:$4 sm:$0xff]   ;;  %v1535_v49 = vld [vmem:[#allocation2 + $0x1f4] ss:$8 sps:$4 sm:$0xff]   ;;  %v1599_v50 = vld [vmem:[#allocation2 + $0x80] ss:$8 sps:$4 sm:$0xff]  }
  0x38   :  { %700 = vmatprep.subr.bf16.mxu1 %v1564_v27  ;;  %v1600_v51 = vld [vmem:[#allocation2 + $0x94] ss:$8 sps:$4 sm:$0xff]   ;;  %v1537_v52 = vld [vmem:[#allocation2 + $0x1f0] ss:$8 sps:$4 sm:$0xff]   ;;  %v1542_v53 = vld [vmem:[#allocation2 + $0x204] ss:$8 sps:$4 sm:$0xff]  }
  0x39   :  { %744 = vmatpush1.bf16.msra.mxu0 %v1504_v9  ;;  %v1605_v54 = vld [vmem:[#allocation2 + $0x90] ss:$8 sps:$4 sm:$0xff]   ;;  %v1606_v55 = vld [vmem:[#allocation2 + $0xa4] ss:$8 sps:$4 sm:$0xff]   ;;  %v1540_v58 = vld [vmem:[#allocation2 + $0x200] ss:$8 sps:$4 sm:$0xff]  }
  0x3a   :  { %745 = vmatprep.subr.bf16.mxu0 %v1505_v10  ;;  %v1842_v56 = vld [vmem:[%s1930_s0 + $0x10] sm:$0xff]  ;;  %v1611_v61 = vld [vmem:[#allocation2 + $0xa0] ss:$8 sps:$4 sm:$0xff]   ;;  %v1550_v1 = vld [vmem:[#allocation2 + $0x224] ss:$8 sps:$4 sm:$0xff]   ;;  %vm1756_vm1 = vmmov 0  }
  0x3b   :  { %701 = vmatpush1.bf16.msra.mxu1 %v1569_v30  ;;  %v1267_v59 = vcombine.high %v1842_v56, %v1842_v56  ;;  %v1545_v60 = vld [vmem:[#allocation2 + $0x214] ss:$8 sps:$4 sm:$0xff]   ;;  %v1543_v63 = vld [vmem:[#allocation2 + $0x210] ss:$8 sps:$4 sm:$0xff]   ;;  %v62_v0 = vld [vmem:[%s1930_s0] sm:$0xff]  ;;  %vm1191_vm2 = vcmask 523264  }
  0x3c   :  { %702 = vmatprep.subr.bf16.mxu1 %v1570_v31  ;;  %v1612_v62 = vld [vmem:[#allocation2 + $0xb4] ss:$8 sps:$4 sm:$0xff]   ;;  %v1263_v2 = vcombine.high %v62_v0, %v62_v0  ;;  %v1617_v3 = vld [vmem:[#allocation2 + $0xb0] ss:$8 sps:$4 sm:$0xff]   ;;  %v1618_v4 = vld [vmem:[#allocation2 + $0xc4] ss:$8 sps:$4 sm:$0xff]  }
  0x3d   :  { %746 = vmatpush1.bf16.msra.mxu0 %v1507_v11  ;;  %v1548_v5 = vld [vmem:[#allocation2 + $0x220] ss:$8 sps:$4 sm:$0xff]   ;;  %v1556_v6 = vld [vmem:[#allocation2 + $0x234] ss:$8 sps:$4 sm:$0xff]   ;;  %v1554_v9 = vld [vmem:[#allocation2 + $0x230] ss:$8 sps:$4 sm:$0xff]  }
  0x3e   :  { %747 = vmatprep.subr.bf16.mxu0 %v1508_v12  ;;  %726 = vmatprep.mubr.bf16.mxu1 %v1263_v2  ;;  %v1623_v7 = vld [vmem:[#allocation2 + $0xc0] ss:$8 sps:$4 sm:$0xff]   ;;  %v1624_v8 = vld [vmem:[#allocation2 + $0xd4] ss:$8 sps:$4 sm:$0xff]   ;;  %v1562_v10 = vld [vmem:[#allocation2 + $0x244] ss:$8 sps:$4 sm:$0xff]   ;;  %v166_v2 = vlaneseq }
  0x3f   :  { %703 = vmatpush1.bf16.msra.mxu1 %v1575_v34  ;;  %v1629_v11 = vld [vmem:[#allocation2 + $0xd0] ss:$8 sps:$4 sm:$0xff]   ;;  %v1560_v12 = vld [vmem:[#allocation2 + $0x240] ss:$8 sps:$4 sm:$0xff]   ;;  %v1632_v13 = vld [vmem:[#allocation2 + $0xe4] ss:$8 sps:$4 sm:$0xff]  }
  0x40   :  { %704 = vmatprep.subr.bf16.mxu1 %v1576_v35  ;;  %v1568_v14 = vld [vmem:[#allocation2 + $0x254] ss:$8 sps:$4 sm:$0xff]   ;;  %v1566_v17 = vld [vmem:[#allocation2 + $0x250] ss:$8 sps:$4 sm:$0xff]   ;;  %v1586_v27 = vld [vmem:[#allocation2 + $0x284] ss:$8 sps:$4 sm:$0xff]  }
  0x41   :  { %748 = vmatpush1.bf16.msra.mxu0 %v1510_v15  ;;  %v1637_v15 = vld [vmem:[#allocation2 + $0xe0] ss:$8 sps:$4 sm:$0xff]   ;;  %v1640_v19 = vld [vmem:[#allocation2 + $0xf0] ss:$8 sps:$4 sm:$0xff]   ;;  %v1580_v22 = vld [vmem:[#allocation2 + $0x274] ss:$8 sps:$4 sm:$0xff]  }
  0x42   :  { %749 = vmatprep.subr.bf16.mxu0 %v1511_v16  ;;  %v1638_v16 = vld [vmem:[#allocation2 + $0xf4] ss:$8 sps:$4 sm:$0xff]   ;;  %v1578_v26 = vld [vmem:[#allocation2 + $0x270] ss:$8 sps:$4 sm:$0xff]   ;;  %v1584_v30 = vld [vmem:[#allocation2 + $0x280] ss:$8 sps:$4 sm:$0xff]  }
  0x43   :  { %705 = vmatpush1.bf16.msra.mxu1 %v1581_v38  ;;  %v1644_v20 = vld [vmem:[#allocation5 + $0x40] sm:$0xff]   ;;  %v1598_v35 = vld [vmem:[#allocation2 + $0x2a4] ss:$8 sps:$4 sm:$0xff]   ;;  %v1596_v38 = vld [vmem:[#allocation2 + $0x2a0] ss:$8 sps:$4 sm:$0xff]  }
  0x44   :  { %706 = vmatprep.subr.bf16.mxu1 %v1582_v39  ;;  %v1645_v23 = vld [vmem:[#allocation5] sm:$0xff]  }
  0x45   :  { %750 = vmatpush1.bf16.msra.mxu0 %v1513_v18  ;;  %v1574_v18 = vld [vmem:[#allocation2 + $0x264] ss:$8 sps:$4 sm:$0xff]   ;;  %v1592_v31 = vld [vmem:[#allocation2 + $0x294] ss:$8 sps:$4 sm:$0xff]   ;;  %v1590_v34 = vld [vmem:[#allocation2 + $0x290] ss:$8 sps:$4 sm:$0xff]  }
  0x46   :  { %751 = vmatprep.subr.bf16.mxu0 %v1514_v21  ;;  %v1572_v21 = vld [vmem:[#allocation2 + $0x260] ss:$8 sps:$4 sm:$0xff]   ;;  %v1604_v39 = vld [vmem:[#allocation2 + $0x2b4] ss:$8 sps:$4 sm:$0xff]  }
  0x47   :  { %707 = vmatpush1.bf16.msra.mxu1 %v1587_v42  ;;  %v1610_v42 = vld [vmem:[#allocation2 + $0x2c4] ss:$8 sps:$4 sm:$0xff]  }
  0x48   :  { %708 = vmatprep.subr.bf16.mxu1 %v1588_v43  ;;  %v1608_v43 = vld [vmem:[#allocation2 + $0x2c0] ss:$8 sps:$4 sm:$0xff]  }
  0x49   :  { %752 = vmatpush1.bf16.msra.mxu0 %v1516_v24  ;;  %v1262_v24 = vcombine.low %v62_v0, %v62_v0 }
  0x4a   :  { %753 = vmatprep.subr.bf16.mxu0 %v1517_v25  ;;  %v1646_v25 = vld [vmem:[#allocation5 + $0x48] sm:$0xff]  }
  0x4b   :  { %709 = vmatpush1.bf16.msra.mxu1 %v1593_v46  ;;  %v1622_v46 = vld [vmem:[#allocation2 + $0x2e4] ss:$8 sps:$4 sm:$0xff]  }
  0x4c   :  { %710 = vmatprep.subr.bf16.mxu1 %v1594_v47  ;;  %v1620_v47 = vld [vmem:[#allocation2 + $0x2e0] ss:$8 sps:$4 sm:$0xff]  }
  0x4d   :  { %754 = vmatpush1.bf16.msra.mxu0 %v1519_v28  ;;  %v1647_v28 = vld [vmem:[#allocation5 + $0x8] sm:$0xff]  }
  0x4e   :  { %755 = vmatprep.subr.bf16.mxu0 %v1520_v29  ;;  %v1648_v29 = vld [vmem:[#allocation5 + $0x50] sm:$0xff]  }
  0x4f   :  { %711 = vmatpush1.bf16.msra.mxu1 %v1599_v50  ;;  %v1636_v50 = vld [vmem:[#allocation2 + $0x304] ss:$8 sps:$4 sm:$0xff]  }
  0x50   :  { %712 = vmatprep.subr.bf16.mxu1 %v1600_v51  ;;  %v1266_v51 = vcombine.low %v1842_v56, %v1842_v56  ;;  %v1658_v56 = vld [vmem:[#allocation5 + $0x78] sm:$0xff]  }
  0x51   :  { %756 = vmatpush1.bf16.msra.mxu0 %v1522_v32  ;;  %v1649_v32 = vld [vmem:[#allocation5 + $0x10] sm:$0xff]  }
  0x52   :  { %757 = vmatprep.subr.bf16.mxu0 %v1523_v33  ;;  %v1650_v33 = vld [vmem:[#allocation5 + $0x58] sm:$0xff]  }
  0x53   :  { %713 = vmatpush1.bf16.msra.mxu1 %v1605_v54  ;;  %v1643_v54 = vld [vmem:[%s1930_s0 + $0x18] ss:$0 sps:$4 sm:$0xff]  }
  0x54   :  { %714 = vmatprep.subr.bf16.mxu1 %v1606_v55  ;;  %v1654_v55 = vld [vmem:[#allocation5 + $0x68] sm:$0xff]  }
  0x55   :  { %758 = vmatpush1.bf16.msra.mxu0 %v1525_v36  ;;  %v1651_v36 = vld [vmem:[#allocation5 + $0x18] sm:$0xff]  }
  0x56   :  { %759 = vmatprep.subr.bf16.mxu0 %v1526_v37  ;;  %v1652_v37 = vld [vmem:[#allocation5 + $0x60] sm:$0xff]  }
  0x57   :  { %715 = vmatpush1.bf16.msra.mxu1 %v1611_v61  ;;  %v1755_v61 = vmov 0.0  }
  0x58   :  { %716 = vmatprep.subr.bf16.mxu1 %v1612_v62 }
  0x59   :  { %760 = vmatpush1.bf16.msra.mxu0 %v1528_v40  ;;  %v1653_v40 = vld [vmem:[#allocation5 + $0x20] sm:$0xff]  }
  0x5a   :  { %761 = vmatprep.subr.bf16.mxu0 %v1529_v41  ;;  %v1602_v41 = vld [vmem:[#allocation2 + $0x2b0] ss:$8 sps:$4 sm:$0xff]  }
  0x5b   :  { %717 = vmatpush1.bf16.msra.mxu1 %v1617_v3  ;;  %v167_v3 = vshrl.u32 %v166_v2, 7 }
  0x5c   :  { %718 = vmatprep.subr.bf16.mxu1 %v1618_v4 }
  0x5d   :  { %762 = vmatpush1.bf16.msra.mxu0 %v1531_v44  ;;  %v1616_v44 = vld [vmem:[#allocation2 + $0x2d4] ss:$8 sps:$4 sm:$0xff]   ;;  %v168_v4 = vsub.s32 0, %v167_v3 }
  0x5e   :  { %763 = vmatprep.subr.bf16.mxu0 %v1532_v45  ;;  %v1614_v45 = vld [vmem:[#allocation2 + $0x2d0] ss:$8 sps:$4 sm:$0xff]  }
  0x5f   :  { %719 = vmatpush1.bf16.msra.mxu1 %v1623_v7 }
  0x60   :  { %720 = vmatprep.subr.bf16.mxu1 %v1624_v8 }
  0x61   :  { %764 = vmatpush1.bf16.msra.mxu0 %v1534_v48  ;;  %v1628_v48 = vld [vmem:[#allocation2 + $0x2f4] ss:$8 sps:$4 sm:$0xff]  }
  0x62   :  { %765 = vmatprep.subr.bf16.mxu0 %v1535_v49  ;;  %v1626_v49 = vld [vmem:[#allocation2 + $0x2f0] ss:$8 sps:$4 sm:$0xff]  }
  0x63   :  { %721 = vmatpush1.bf16.msra.mxu1 %v1629_v11 }
  0x64   :  { %722 = vmatprep.subr.bf16.mxu1 %v1632_v13 }
  0x65   :  { %766 = vmatpush1.bf16.msra.mxu0 %v1537_v52  ;;  %v1634_v52 = vld [vmem:[#allocation2 + $0x300] ss:$8 sps:$4 sm:$0xff]  }
  0x66   :  { %776 = vmatprep.subr.bf16.mxu0 %v1542_v53  ;;  %v1754_v53 = vmov 0  }
  0x67   :  { %723 = vmatpush1.bf16.msra.mxu1 %v1637_v15 }
  0x68   :  { %768 = vmatmul.mubr.bf16.vlgmr.msra.gmra.mrb[0].mxu0 %v1264_v57  ;;  %724 = vmatprep.subr.bf16.mxu1 %v1638_v16  ;;  %v1655_v57 = vld [vmem:[#allocation5 + $0x28] sm:$0xff]  }
  0x69   :  { %777 = vmatpush1.bf16.msra.mxu0 %v1540_v58  ;;  %808 = vmatprep.mubr.bf16.mxu0 %v1267_v59  ;;  %v1656_v58 = vld [vmem:[#allocation5 + $0x70] sm:$0xff]  }
  0x6a   :  { %778 = vmatprep.subr.bf16.mxu0 %v1545_v60  ;;  %v1657_v59 = vld [vmem:[#allocation5 + $0x30] sm:$0xff]   ;;  %v1659_v60 = vld [vmem:[#allocation5 + $0x38] sm:$0xff]  }
  0x6b   :  { %725 = vmatpush1.bf16.msra.mxu1 %v1640_v19 }
  0x6c   :  { %1400 = vmatprep.subr.bf16.mxu1 %v1644_v20  ;;  %v1660_v20 = vld [vmem:[%s1935_s5] sm:$0xff]  }
  0x6d   :  { %779 = vmatpush1.bf16.msra.mxu0 %v1543_v63 }
  0x6e   :  { %780 = vmatprep.subr.bf16.mxu0 %v1550_v1  ;;  %727 = vmatmul.mubr.bf16.vlgmr.msra.gmra.mrb[0].mxu1 %v1262_v24  ;;  %v1663_v24 = vld [vmem:[%s1935_s5 + $0x18] sm:$0xff]  }
  0x6f   :  { %1401 = vmatpush3.bf16.msra.mxu1 %v1645_v23  ;;  %v1662_v23 = vld [vmem:[%s1935_s5 + $0x10] sm:$0xff]  }
  0x70   :  { %1402 = vmatprep.subr.bf16.mxu1 %v1646_v25  ;;  %v1664_v25 = vld [vmem:[%s1935_s5 + $0x20] sm:$0xff]  }
  0x71   :  { %781 = vmatpush1.bf16.msra.mxu0 %v1548_v5  ;;  %v164_v5 = vld [vmem:[%s1932_s2] sm:$0x3] }
  0x72   :  { %782 = vmatprep.subr.bf16.mxu0 %v1556_v6  ;;  %v172_v6 = vsub.s32 1, %v167_v3  ;;  %v169_v7 = vrot.slane %v164_v5, %v168_v4 }
  0x73   :  { %1403 = vmatpush3.bf16.msra.mxu1 %v1647_v28  ;;  %v1667_v28 = vld [vmem:[%s1935_s5 + $0x38] sm:$0xff]  }
  0x74   :  { %1404 = vmatprep.subr.bf16.mxu1 %v1648_v29  ;;  %v173_v8 = vrot.slane %v164_v5, %v172_v6 }
  0x75   :  { %783 = vmatpush1.bf16.msra.mxu0 %v1554_v9 }
  0x76   :  { %784 = vmatprep.subr.bf16.mxu0 %v1562_v10 }
  0x77   :  { %1405 = vmatpush3.bf16.msra.mxu1 %v1649_v32 }
  0x78   :  { %1406 = vmatprep.subr.bf16.mxu1 %v1650_v33 }
  0x79   :  { %785 = vmatpush1.bf16.msra.mxu0 %v1560_v12 }
  0x7a   :  { %786 = vmatprep.subr.bf16.mxu0 %v1568_v14 }
  0x7b   :  { %1407 = vmatpush3.bf16.msra.mxu1 %v1651_v36 }
  0x7c   :  { %1408 = vmatprep.subr.bf16.mxu1 %v1652_v37  ;;  %v1668_v37 = vld [vmem:[%s1937_s7] sm:$0xff]  }
  0x7d   :  { %787 = vmatpush1.bf16.msra.mxu0 %v1566_v17 }
  0x7e   :  { %788 = vmatprep.subr.bf16.mxu0 %v1574_v18 }
  0x7f   :  { %1409 = vmatpush3.bf16.msra.mxu1 %v1653_v40  ;;  %v1670_v40 = vld [vmem:[%s1937_s7 + $0x10] sm:$0xff]  }
  0x80   :  { %1410 = vmatprep.subr.bf16.mxu1 %v1654_v55 }
  0x81   :  { %789 = vmatpush1.bf16.msra.mxu0 %v1572_v21 }
  0x82   :  { %790 = vmatprep.subr.bf16.mxu0 %v1580_v22  ;;  %v1661_v22 = vld [vmem:[%s1935_s5 + $0x8] sm:$0xff]  }
  0x83   :  { %1411 = vmatpush3.bf16.msra.mxu1 %v1655_v57 }
  0x84   :  { %1412 = vmatprep.subr.bf16.mxu1 %v1656_v58 }
  0x85   :  { %791 = vmatpush1.bf16.msra.mxu0 %v1578_v26  ;;  %v1665_v26 = vld [vmem:[%s1935_s5 + $0x28] sm:$0xff]  }
  0x86   :  { %792 = vmatprep.subr.bf16.mxu0 %v1586_v27  ;;  %v1666_v27 = vld [vmem:[%s1935_s5 + $0x30] sm:$0xff]  }
  0x87   :  { %1413 = vmatpush3.bf16.msra.mxu1 %v1657_v59 }
  0x88   :  { %1414 = vmatprep.subr.bf16.mxu1 %v1658_v56 }
  0x89   :  { %793 = vmatpush1.bf16.msra.mxu0 %v1584_v30  ;;  %v1368_v30 = vld [vmem:[%s1934_s4] ss:$0 sm:$0xff] }
  0x8a   :  { %794 = vmatprep.subr.bf16.mxu0 %v1592_v31 }
  0x8b   :  { %1415 = vmatpush3.bf16.msra.mxu1 %v1659_v60 }
  0x8c   :  { %1436 = vmatprep.subr.bf16.mxu1 %v1755_v61 }
  0x8d   :  { %795 = vmatpush1.bf16.msra.mxu0 %v1590_v34 }
  0x8e   :  { %796 = vmatprep.subr.bf16.mxu0 %v1598_v35 }
  0x91   :  { %797 = vmatpush1.bf16.msra.mxu0 %v1596_v38 }
  0x92   :  { %798 = vmatprep.subr.bf16.mxu0 %v1604_v39  ;;  %v1669_v39 = vld [vmem:[%s1937_s7 + $0x8] sm:$0xff]  }
  0x95   :  { %799 = vmatpush1.bf16.msra.mxu0 %v1602_v41  ;;  %v1671_v41 = vld [vmem:[%s1937_s7 + $0x18] sm:$0xff]  }
  0x96   :  { %800 = vmatprep.subr.bf16.mxu0 %v1610_v42  ;;  %v1385_v42 = vld [vmem:[%s1936_s6] ss:$0 sm:$0xff]  ;;  %s1757_s6 = smov [#allocation7]  }
  0x97   :  { %s1252_s7 = sshll.u32 %s1757_s6, 4  ;;  %s1253_s7 = int_to_ptr.vmem [resolvable:$true] %s1252_s7 }
  0x98   :  { %p1725_p3 = scmp.lt.s32.totalorder %s1253_s7, %s1253_s7 }
  0x99   :  { %801 = vmatpush1.bf16.msra.mxu0 %v1608_v43 }
  0x9a   :  { %802 = vmatprep.subr.bf16.mxu0 %v1616_v44 }
  0x9d   :  { %803 = vmatpush1.bf16.msra.mxu0 %v1614_v45 }
  0x9e   :  { %804 = vmatprep.subr.bf16.mxu0 %v1622_v46 }
  0xa1   :  { %805 = vmatpush1.bf16.msra.mxu0 %v1620_v47 }
  0xa2   :  { %806 = vmatprep.subr.bf16.mxu0 %v1628_v48 }
  0xa5   :  { %807 = vmatpush1.bf16.msra.mxu0 %v1626_v49 }
  0xa6   :  { %817 = vmatprep.subr.bf16.mxu0 %v1636_v50  ;;  %v1394_v50 = vld [vmem:[%s1938_s8] ss:$0 sm:$0xff]  ;;  %s1720_s8 = scalar_lea.vmem %s1253_s7, 128 }
  0xa7   :  { %p1721_p2 = scmp.ne.s32.totalorder %s1253_s7, %s1720_s8  ;;  %p1726_p4 = scmp.lt.s32.totalorder %s1720_s8, %s1720_s8 }
  0xa8   :  { %809 = vmatmul.mubr.bf16.vlgmr.msra.gmra.mrb[0].mxu0 %v1266_v51 }
  0xa9   :  { %818 = vmatpush1.bf16.msra.mxu0 %v1634_v52  ;;  %849 = vmatprep.mubr.bf16.mxu0 %v1754_v53  ;;  %p1727_p5 = por %p1726_p4, %p1725_p3 }
  0xab   :  { %p1728_p6 = pnand %p1727_p5, %p1721_p2 }
  0xb4   :  { %1367 = vmatmul.mubr.msk.bf16.vlgmr.msra.gmra.mrb[0].mxu0 %vm690_vm0, %v1643_v54 }
 0x141   :  { %v728_v62 = vpop.f32.mrb[0].mxu1 }
 0x142   :  { %v730_v63 = vpop.f32.mrb[1].mxu1  ;;  %v729_v9 = vadd.f32 %v728_v62, %v169_v7 }
 0x143   :  { %v732_v0 = vpop.f32.mrb[2].mxu1  ;;  %v731_v10 = vadd.f32 %v730_v63, %v173_v8 }
 0x144   :  { %v733_v1 = vpop.f32.mrb[3].mxu1 }
 0x187   :  { %v851_v11 = vpop.f32.mrb[0].mxu0 }
 0x188   :  { %v1469_v12 = vadd.f32 %v851_v11, %v729_v9  ;;  %v853_v13 = vpop.f32.mrb[1].mxu0 }
 0x189   :  { %v1471_v14 = vadd.f32 %v853_v13, %v731_v10  ;;  %v855_v15 = vpop.f32.mrb[2].mxu0 }
 0x18a   :  { %v858_v16 = vmax.f32 %v1469_v12, 0.0  ;;  %v856_v17 = vpop.f32.mrb[3].mxu0 }
 0x18b   :  { %v859_v18 = vmax.f32 %v1471_v14, 0.0 }
 0x18c   :  { %v860_v21 = vpack.c.bf16 %v858_v16, %v858_v16 }
 0x18d   :  { %v861_v19 = vpack.c.bf16 %v859_v18, %v859_v18 }
 0x18f   :  { %1029 = vmatprep.mubr.bf16.mxu1 %v861_v19 }
 0x190   :  { %1030 = vmatmul.mubr.bf16.vlgmr.msra.gmra.mrb[4].mxu1 %v860_v21 }
 0x191   :  { %1437 = vmatpush3.bf16.msra.mxu1 %v1660_v20  ;;  %1452 = vmatprep.mubr.msk.bf16.mxu1 %vm1756_vm1, %v1755_v61 }
 0x192   :  { %1438 = vmatprep.subr.bf16.mxu1 %v1755_v61 }
 0x195   :  { %1439 = vmatpush3.bf16.msra.mxu1 %v1661_v22 }
 0x196   :  { %1440 = vmatprep.subr.bf16.mxu1 %v1755_v61 }
 0x199   :  { %1441 = vmatpush3.bf16.msra.mxu1 %v1662_v23 }
 0x19a   :  { %1442 = vmatprep.subr.bf16.mxu1 %v1755_v61 }
 0x19d   :  { %1443 = vmatpush3.bf16.msra.mxu1 %v1663_v24 }
 0x19e   :  { %1444 = vmatprep.subr.bf16.mxu1 %v1755_v61 }
 0x1a1   :  { %1445 = vmatpush3.bf16.msra.mxu1 %v1664_v25 }
 0x1a2   :  { %1446 = vmatprep.subr.bf16.mxu1 %v1755_v61 }
 0x1a5   :  { %1447 = vmatpush3.bf16.msra.mxu1 %v1665_v26 }
 0x1a6   :  { %1448 = vmatprep.subr.bf16.mxu1 %v1755_v61 }
 0x1a9   :  { %1449 = vmatpush3.bf16.msra.mxu1 %v1666_v27 }
 0x1aa   :  { %1450 = vmatprep.subr.bf16.mxu1 %v1755_v61 }
 0x1ad   :  { %1451 = vmatpush3.bf16.msra.mxu1 %v1667_v28 }
 0x1ae   :  { %1456 = vmatprep.subr.bf16.mxu1 %v1755_v61 }
 0x263   :  { %v1416_v29 = vpop.f32.mrb[4].mxu1 }
 0x264   :  { %v1417_v31 = vpop.f32.mrb[5].mxu1 }
 0x265   :  { %v1418_v32 = vadd.f32 %v1417_v31, %v1416_v29  ;;  %v1419_v33 = vpop.f32.mrb[6].mxu1 }
 0x266   :  { %v1420_v34 = vpop.f32.mrb[7].mxu1 }
 0x267   :  { %v1032_v35 = vadd.f32 %v1418_v32, %v1368_v30 }
 0x269   :  { %v1037_v36 = vmax.f32 %v1032_v35, 0.0 }
 0x26b   :  { %v1038_v38 = vpack.c.bf16 %v1037_v36, %v1037_v36 }
 0x26d   :  { %1453 = vmatmul.mubr.bf16.vlgmr.msra.gmra.mrb[8].mxu1 %v1038_v38 }
 0x26e   :  { %1457 = vmatpush3.bf16.msra.mxu1 %v1668_v37  ;;  %1464 = vmatprep.mubr.msk.bf16.mxu1 %vm1756_vm1, %v1755_v61 }
 0x26f   :  { %1458 = vmatprep.subr.bf16.mxu1 %v1755_v61 }
 0x272   :  { %1459 = vmatpush3.bf16.msra.mxu1 %v1669_v39 }
 0x273   :  { %1460 = vmatprep.subr.bf16.mxu1 %v1755_v61 }
 0x276   :  { %1461 = vmatpush3.bf16.msra.mxu1 %v1670_v40 }
 0x277   :  { %1462 = vmatprep.subr.bf16.mxu1 %v1755_v61 }
 0x27a   :  { %1463 = vmatpush3.bf16.msra.mxu1 %v1671_v41 }
 0x340   :  { %v1144_v43 = vpop.f32.mrb[8].mxu1 }
 0x341   :  { %v1145_v44 = vadd.f32 %v1385_v42, %v1144_v43  ;;  %v1454_v45 = vpop.f32.mrb[9].mxu1 }
 0x342   :  { %v1147_v46 = vpop.f32.mrb[10].mxu1 }
 0x343   :  { %v1150_v47 = vmax.f32 %v1145_v44, 0.0  ;;  %v1455_v48 = vpop.f32.mrb[11].mxu1 }
 0x345   :  { %v1151_v49 = vpack.c.bf16 %v1150_v47, %v1150_v47 }
 0x347   :  { %1465 = vmatmul.mubr.msk.bf16.vlgmr.msra.gmra.mrb[12].mxu1 %vm1191_vm2, %v1151_v49 }
 0x41a   :  { %v1229_v51 = vpop.f32.mrb[12].mxu1 }
 0x41b   :  { %v1230_v52 = vadd.f32 %v1394_v50, %v1229_v51  ;;  %v1466_v53 = vpop.f32.mrb[13].mxu1 }
 0x41c   :  { %v1232_v54 = vpop.f32.mrb[14].mxu1 }
 0x41d   :  { %1235 = vmax.xlane.f32.xlu0 %v1230_v52  ;;  %v1467_v55 = vpop.f32.mrb[15].mxu1 }
 0x4aa   :  { %v1236_v57 = vpop.xlane.xlu0 %1235 }
 0x4ab   :  { %v1237_v58 = vsub.f32 %v1230_v52, %v1236_v57 }
 0x4ad   :  { %v1238_v59 = vmul.f32 1.442695, %v1237_v58 }
 0x4af   :  { %1672 = vpow2.f32 %v1238_v59 }
 0x4b9   :  { %v1673_v56 = vpop.eup %1672 }
 0x4ba   :  { %1240 = vadd.xlane.f32.xlu0 %v1673_v56 }
 0x547   :  { %v1241_v60 = vpop.xlane.xlu0 %1240 }
 0x548   :  { %1674 = vlog2.f32 %v1241_v60 }
 0x552   :  { %v1675_v61 = vpop.eup %1674 }
 0x553   :  { %v1243_v62 = vmul.f32 0.6931472, %v1675_v61 }
 0x555   :  { %v1244_v63 = vsub.f32 %v1237_v58, %v1243_v62 }
 0x557   :  { %1245 = vst [vmem:[#allocation7] sm:$0xff] %v1244_v63 }
 0x558   :  { %1731 = shalt.err (!%p1728_p6)
}
 0x559   :  { %s1732_s27 = scalar_lea.hbm %s1939_s9, 128 }
 0x55a   :  { %p1733_p7 = scmp.ne.s32.totalorder %s1939_s9, %s1732_s27  ;;  %p1736_p8 = scmp.lt.u32.totalorder %s1732_s27, %s1939_s9 }
 0x55c   :  { %p1738_p9 = pnand %p1736_p8, %p1733_p7 }
 0x55e   :  { %1741 = shalt.err (!%p1738_p9)
}
 0x55f   :  { %1255 = dma.vmem_to_hbm [thread:$0]  %s1253_s7, 128, %s1939_s9, [#allocation4]  }
 0x560   :  { %1746 = dma.done.wait [#allocation4], 128  }
 0x561   :  { %1747 = vsyncadd [#allocation4], 4294967168 }
 0x562   :  { %1259 = vsyncpa [#allocation3], 1 }
 0x563   :  { %1260 = vsyncpa [#allocation6], 1 }
 0x564   :  { %1261 = vsyncpa [#allocation4], 1 }

</bundles_post_ra>
